<compile_context>
chip_gen: v7x
topology: tpu7x:2x2x1
jax: 0.10.0
libtpu: 0.0.40
codegen_flags: <defaults>
</compile_context>

<pallas_src>
import functools

import jax
import jax.numpy as jnp
from jax.experimental import pallas as pl
from jax.experimental.pallas import tpu as pltpu

EPS = 1e-5
RES_BLOCKS = 2

# 3x3 conv tap order (dy outer, dx inner) == PyTorch (kh, kw) weight order.
_TAPS = tuple((dy, dx) for dy in (-1, 0, 1) for dx in (-1, 0, 1))


# --------------------------------------------------------------------------
# Runtime probe: does pltpu.roll follow np.roll semantics?  (Used to pick the
# rotate sign so the conv taps read the intended neighbour.)
# --------------------------------------------------------------------------
_ROLL_NUMPY = None


def _roll_follows_numpy():
    global _ROLL_NUMPY
    if _ROLL_NUMPY is None:
        def probe(x_ref, o_ref):
            o_ref[...] = pltpu.roll(x_ref[...], 1, 1)

        x = jnp.tile(jnp.arange(128, dtype=jnp.float32)[None, :], (8, 1))
        y = pl.pallas_call(
            probe, out_shape=jax.ShapeDtypeStruct((8, 128), jnp.float32))(x)
        v = float(y[0, 0])
        if v == 127.0:
            _ROLL_NUMPY = True     # result[i] = x[i - shift]  (np.roll)
        elif v == 1.0:
            _ROLL_NUMPY = False    # result[i] = x[i + shift]
        else:
            raise RuntimeError("unexpected pltpu.roll semantics")
    return _ROLL_NUMPY


# --------------------------------------------------------------------------
# Fused Pallas kernel: whole coupling network, TB images per grid step.
# --------------------------------------------------------------------------
def _make_kernel(H, W, C, D, RB, TB, roll_numpy):
    HW = H * W
    L = TB * HW
    Ch = C // 2

    def tap_amt(s):  # rotate amount so result[:, p] == src[:, p + s]
        return ((-s) % L) if roll_numpy else (s % L)

    def kernel(x_ref, mask_ref, inbn_ref, w0_ref, b_in_ref, b_skip_ref,
               bn1_ref, w1_ref, bn2_ref, w2e_ref, b2_ref,
               obn_ref, wos_ref, wor_ref, bos_ref, bor_ref, cpl_ref,
               on_out_ref, logj_ref, p0_ref, pat_ref):

        def shifted(v, s):
            # shifted(v, s)[:, p] == v[:, p + s] wherever p+s lies inside the
            # same image; every other (wrapped) position is killed by the
            # per-tap boundary mask below.
            return v if s == 0 else pltpu.roll(v, tap_amt(s), 1)

        xv = x_ref[0]                                    # (C, L) f32
        on = xv[:Ch, :]                                  # (Ch, L)
        off = xv[Ch:, :]                                 # (Ch, L)

        inbn = inbn_ref[...]                             # (2, Ch, 1)
        t = off * inbn[0] + inbn[1]                      # eval-mode in_bn(off)

        # im2col of h0 = [relu(t); relu(-t)] (the block input) -> f32 scratch.
        for k, (dy, dx) in enumerate(_TAPS):
            s = dy * W + dx
            rt = shifted(t, s)
            a = jnp.maximum(rt, 0.0)
            b = jnp.maximum(-rt, 0.0)
            if (dy, dx) != (0, 0):
                mk = mask_ref[k]                         # (1, L)
                a = a * mk
                b = b * mk
            p0_ref[k * C:k * C + Ch, :] = a
            p0_ref[k * C + Ch:(k + 1) * C, :] = b

        def conv3x3(h, w_bf16):
            """(D, L) -> (Cout, L): bf16 im2col (mask folded into the per-tap
            cast) + one MXU matmul W(Cout, 9D) @ P(9D, L)."""
            for k, (dy, dx) in enumerate(_TAPS):
                s = dy * W + dx
                v = shifted(h, s)
                if (dy, dx) != (0, 0):
                    v = v * mask_ref[k]                  # f32 mul (v5e-safe)
                pat_ref[k * D:(k + 1) * D, :] = v.astype(jnp.bfloat16)
            return jnp.dot(w_bf16, pat_ref[...],
                           preferred_element_type=jnp.float32)

        # ---------------- ResidualModule (all skip 1x1s pre-folded) --------
        o0 = jnp.dot(w0_ref[...], p0_ref[...].astype(jnp.bfloat16),
                     preferred_element_type=jnp.float32)             # (2D, L)
        h = o0[:D, :] + b_in_ref[...]                    # in_block output
        skip = o0[D:, :] + b_skip_ref[...]               # folded skip path
        for r in range(RB):
            sb1 = bn1_ref[r]                             # (2, D, 1)
            tm = jnp.maximum(h * sb1[0] + sb1[1], 0.0)
            tm = conv3x3(tm, w1_ref[r])                  # (D, L)
            sb2 = bn2_ref[r]
            tm = jnp.maximum(tm * sb2[0] + sb2[1], 0.0)
            o = conv3x3(tm, w2e_ref[r])                  # (2D, L) extended
            h = h + o[:D, :] + b2_ref[r]
            skip = skip + o[D:, :]

        obn = obn_ref[...]
        ho = jnp.maximum(skip * obn[0] + obn[1], 0.0).astype(jnp.bfloat16)
        shift = jnp.dot(wos_ref[...], ho,
                        preferred_element_type=jnp.float32) + bos_ref[...]
        raw = jnp.dot(wor_ref[...], ho,
                      preferred_element_type=jnp.float32) + bor_ref[...]

        # ---------------- affine coupling tail (eval, forward) -------------
        cpl = cpl_ref[...]   # rows: scale, scale_shift, rm, 1/std, -0.5*log(var+eps)
        lr = cpl[0] * jnp.tanh(raw) + cpl[1]             # log_rescale
        on_new = on * jnp.exp(lr) + shift
        on_out_ref[0] = (on_new - cpl[2]) * cpl[3]       # out_bn (eval)
        logj_ref[0] = lr + cpl[4]

    return kernel


# --------------------------------------------------------------------------
# Parameter folding helpers
# --------------------------------------------------------------------------
def _bn_scale_bias(bn):
    s = bn["gamma"] / jnp.sqrt(bn["rv"] + EPS)
    b = bn["beta"] - bn["rm"] * s
    return s, b


def _w3_mat(w):
    """(O, I, 3, 3) conv weight -> (O, 9*I) matmul operand (tap-major K)."""
    o = w.shape[0]
    return jnp.transpose(w, (0, 2, 3, 1)).reshape(o, -1)


def _w1_mat(w):
    """(O, I, 1, 1) conv weight -> (O, I)."""
    return w[:, :, 0, 0]


def _col(v):
    return v.reshape(-1, 1)


def _pick_images_per_step(B, max_tb=8):
    """Largest divisor of B that still leaves >= 2 grid steps when possible
    (keeps both v7x TensorCores busy) while amortizing per-step overhead."""
    target = min(max_tb, max(1, B // 2))
    for tb in range(target, 0, -1):
        if B % tb == 0:
            return tb
    return 1


# --------------------------------------------------------------------------
# Forward pass (ChannelwiseCoupling -> ChannelwiseAffineCoupling, eval, fwd)
# --------------------------------------------------------------------------
def channelwise_coupling_forward(x_nchw, params):
    return _forward(x_nchw, params, _roll_follows_numpy())


@functools.partial(jax.jit, static_argnums=(2,))
def _forward(x_nchw, p, roll_numpy):
    B, C, H, W = x_nchw.shape
    Ch = C // 2
    HW = H * W
    D = p["in_block_w"].shape[0]
    RB = len(p["blocks"])
    TB = _pick_images_per_step(B)
    G = B // TB
    L = TB * HW

    x = x_nchw.astype(jnp.float32)
    off_nchw = x[:, Ch:]
    # (G, C, TB*HW): TB images stacked along the lane (pixel) axis.
    x_in = x.reshape(G, TB, C, HW).transpose(0, 2, 1, 3).reshape(G, C, L)

    # Per-tap validity masks: kill everything that wraps across row / column /
    # image boundaries under the circular lane rotation.
    m = jnp.arange(HW, dtype=jnp.int32)
    yi, xi = m // W, m % W
    masks = jnp.stack(
        [((yi + dy >= 0) & (yi + dy < H) & (xi + dx >= 0) & (xi + dx < W)
          ).astype(jnp.float32) for dy, dx in _TAPS], axis=0)        # (9, HW)
    masks = jnp.tile(masks, (1, TB)).reshape(9, 1, L)

    # ----- fold parameters: BN -> scale/bias, skip 1x1s into the 3x3s ------
    s_in, b_inbn = _bn_scale_bias(p["in_bn"])
    inbn = jnp.stack([_col(s_in), _col(b_inbn)])                     # (2, Ch, 1)

    w_in = _w3_mat(p["in_block_w"])                                  # (D, 9C)
    b_in = p["in_block_b"]
    w_isk = _w1_mat(p["in_skip_w"])
    b_isk = p["in_skip_b"]

    wsk = [_w1_mat(b["skip_w"]) for b in p["blocks"]]
    bsk = [b["skip_b"] for b in p["blocks"]]
    w2m = [_w3_mat(b["conv2_w"]) for b in p["blocks"]]
    b2v = [b["conv2_b"] for b in p["blocks"]]
    w1m = [_w3_mat(b["conv1_w"]) for b in p["blocks"]]

    # skip_total = A0 @ h0 + sum_r A[r] @ d_r + const,
    #   A[r] = sum_{j>=r} Wsk_j ,  A0 = W_isk + A[0] ,  d_r = conv2_r(t_r)+b2_r
    A = [None] * RB
    acc = jnp.zeros((D, D), jnp.float32)
    for r in range(RB - 1, -1, -1):
        acc = acc + wsk[r]
        A[r] = acc
    A0 = w_isk + A[0]
    w0_ext = jnp.concatenate([w_in, A0 @ w_in], axis=0).astype(jnp.bfloat16)
    w2_ext = jnp.stack([jnp.concatenate([w2m[r], A[r] @ w2m[r]], axis=0)
                        for r in range(RB)]).astype(jnp.bfloat16)    # (RB, 2D, 9D)
    w1_st = jnp.stack(w1m).astype(jnp.bfloat16)                      # (RB, D, 9D)
    b_skip = A0 @ b_in + b_isk
    for r in range(RB):
        b_skip = b_skip + A[r] @ b2v[r] + bsk[r]

    bn1_l, bn2_l, b2_l = [], [], []
    for blk in p["blocks"]:
        s1, bb1 = _bn_scale_bias(blk["bn1"])
        s2, bb2 = _bn_scale_bias(blk["bn2"])
        bn1_l.append(jnp.stack([_col(s1), _col(bb1)]))
        bn2_l.append(jnp.stack([_col(s2), _col(bb2)]))
        b2_l.append(_col(blk["conv2_b"]))
    bn1 = jnp.stack(bn1_l)                                           # (RB, 2, D, 1)
    bn2 = jnp.stack(bn2_l)
    b2c = jnp.stack(b2_l)                                            # (RB, D, 1)

    so, bo = _bn_scale_bias(p["out_bn_mod"])
    obn = jnp.stack([_col(so), _col(bo)])                            # (2, D, 1)

    w_out = _w1_mat(p["out_w"])                                      # (C, D)
    wos = w_out[:Ch].astype(jnp.bfloat16)
    wor = w_out[Ch:].astype(jnp.bfloat16)
    bos = _col(p["out_b"][:Ch])
    bor = _col(p["out_b"][Ch:])

    rv, rm = p["cpl_bn"]["rv"], p["cpl_bn"]["rm"]
    cpl = jnp.stack([_col(jnp.broadcast_to(p["scale"], (Ch,))),
                     _col(jnp.broadcast_to(p["scale_shift"], (Ch,))),
                     _col(rm),
                     _col(1.0 / jnp.sqrt(rv + EPS)),
                     _col(-0.5 * jnp.log(rv + EPS))])                # (5, Ch, 1)

    consts = (masks, inbn, w0_ext, _col(b_in), _col(b_skip),
              bn1, w1_st, bn2, w2_ext, b2c, obn, wos, wor, bos, bor, cpl)

    def _const_spec(a):  # whole array resident in VMEM, constant block index
        return pl.BlockSpec(a.shape, lambda g, _n=a.ndim: (0,) * _n)

    flops = 2 * B * HW * ((2 * D) * 9 * C
                          + RB * (D * 9 * D + (2 * D) * 9 * D)
                          + C * D)
    bytes_accessed = 4 * (int(x_in.size) + 2 * G * Ch * L) + sum(
        int(a.size) * a.dtype.itemsize for a in consts)
    cost = pl.CostEstimate(flops=int(flops),
                           transcendentals=int(2 * B * HW * Ch),
                           bytes_accessed=int(bytes_accessed))

    kernel = _make_kernel(H, W, C, D, RB, TB, roll_numpy)
    on_out, logj_on = pl.pallas_call(
        kernel,
        out_shape=(jax.ShapeDtypeStruct((G, Ch, L), jnp.float32),
                   jax.ShapeDtypeStruct((G, Ch, L), jnp.float32)),
        grid=(G,),
        in_specs=[pl.BlockSpec((1, C, L), lambda g: (g, 0, 0))]
                 + [_const_spec(a) for a in consts],
        out_specs=(pl.BlockSpec((1, Ch, L), lambda g: (g, 0, 0)),
                   pl.BlockSpec((1, Ch, L), lambda g: (g, 0, 0))),
        scratch_shapes=[pltpu.VMEM((9 * C, L), jnp.float32),      # first conv
                        pltpu.VMEM((9 * D, L), jnp.bfloat16)],    # main im2col
        compiler_params=pltpu.CompilerParams(
            dimension_semantics=("parallel",)),
        cost_estimate=cost,
    )(x_in, *consts)

    def _unstack(a):  # (G, Ch, TB*HW) -> (B, Ch, H, W)
        return (a.reshape(G, Ch, TB, H, W).transpose(0, 2, 1, 3, 4)
                 .reshape(B, Ch, H, W))

    on_out = _unstack(on_out)
    logj_on = _unstack(logj_on)
    # mask_config=1: output is cat(on, off); Jacobian is cat(log_rescale, 0).
    x_out = jnp.concatenate([on_out, off_nchw], axis=1)
    logj = jnp.concatenate([logj_on, jnp.zeros_like(logj_on)], axis=1)
    return x_out, logj


# --------------------------------------------------------------------------
# Parameters (deterministic, synthetic)
# --------------------------------------------------------------------------
def init_params(key, C, D):
    Ch = C // 2
    keys = iter(jax.random.split(key, 128))

    def nrm(shape, s=0.1):
        return s * jax.random.normal(next(keys), shape, jnp.float32)

    def pos(shape):
        return 0.5 + jax.random.uniform(next(keys), shape, dtype=jnp.float32)

    def bn(c):
        return dict(gamma=1.0 + nrm((c,)), beta=nrm((c,)),
                    rm=nrm((c,)), rv=pos((c,)))

    def wn(w):  # weight_norm with scale=False: w_eff = v / ||v|| per out chan
        n = jnp.sqrt(jnp.sum(w * w, axis=(1, 2, 3), keepdims=True))
        return w / n

    p = {}
    p["in_bn"] = bn(Ch)
    p["in_block_w"] = wn(nrm((D, C, 3, 3)))
    p["in_block_b"] = nrm((D,))
    p["in_skip_w"] = nrm((D, D, 1, 1))
    p["in_skip_b"] = nrm((D,))
    blocks = []
    for _ in range(RES_BLOCKS):
        blocks.append(dict(
            bn1=bn(D),
            conv1_w=wn(nrm((D, D, 3, 3))),
            bn2=bn(D),
            conv2_w=nrm((D, D, 3, 3)),   # scale=True -> original weight
            conv2_b=nrm((D,)),
            skip_w=nrm((D, D, 1, 1)),
            skip_b=nrm((D,)),
        ))
    p["blocks"] = blocks
    p["out_bn_mod"] = bn(D)
    p["out_w"] = nrm((C, D, 1, 1))
    p["out_b"] = nrm((C,))
    p["scale"] = nrm((1,))
    p["scale_shift"] = nrm((1,))
    p["cpl_bn"] = dict(rm=nrm((Ch,)), rv=pos((Ch,)))  # out_bn (affine=False)
    return p


if __name__ == "__main__":
    key = jax.random.PRNGKey(0)
    kx, kp = jax.random.split(key)

    B, C, H, W = 2, 4, 16, 16
    D = 32  # mid_dim
    x = jax.random.normal(kx, (B, C, H, W), jnp.float32)
    params = init_params(kp, C, D)

    y, log_diag_J = channelwise_coupling_forward(x, params)
    jax.block_until_ready((y, log_diag_J))

    assert y.shape == (B, C, H, W) and log_diag_J.shape == (B, C, H, W)
    assert bool(jnp.all(jnp.isfinite(y))) and bool(jnp.all(jnp.isfinite(log_diag_J)))
    print("KERNEL_OK")
</pallas_src>

<mosaic_0001>
module attributes {stable_mosaic.version = 11 : i64} {
  func.func @probe(%arg0: memref<8x128xf32, #tpu.memory_space<vmem>>, %arg1: memref<8x128xf32, #tpu.memory_space<vmem>>) attributes {dimension_semantics = [], scalar_prefetch = 0 : i64, scratch_operands = 0 : i64, tpu.core_type = #tpu.core_type<tc>} {
    %c0 = arith.constant 0 : index
    %c0_0 = arith.constant 0 : index
    %0 = vector.load %arg0[%c0, %c0_0] : memref<8x128xf32, #tpu.memory_space<vmem>>, vector<8x128xf32>
    %c1_i32 = arith.constant 1 : i32
    %1 = tpu.dynamic_rotate %0 by %c1_i32 dim 1 : vector<8x128xf32>, i32 -> vector<8x128xf32>
    %c0_1 = arith.constant 0 : index
    %c0_2 = arith.constant 0 : index
    %2 = vector.load %arg1[%c0_1, %c0_2] : memref<8x128xf32, #tpu.memory_space<vmem>>, vector<8x128xf32>
    tpu.vector_store %arg1[%c0_1, %c0_2], %1 {strides = array<i32>} : memref<8x128xf32, #tpu.memory_space<vmem>>, vector<8x128xf32>,
    return
  }
}

</mosaic_0001>

<bundles_post_ra>
// kernel: tpu_custom_call.1
= control target key start
LH: loop header
LB: loop body
LE: loop exit
PB: predicated region body
PF: predicated region fallthrough
CT: control target
= control target key end

     0   :  { %6 = vsyncpa [#allocation3], 0  ;;  %s128_s0 = inlined_call_operand.hbm [shape: f32[8,128], index: 0, kind: input, shape index: {}]   ;;  %s129_s1 = inlined_call_operand.hbm [shape: f32[8,128], index: 1, kind: output, shape index: {}]  }
   0x1   :  { %7 = vsyncpa [#allocation4], 0  ;;  %s91_s6 = smov [#allocation2]   ;;  %s43_s10 = scalar_lea.hbm %s128_s0, 128 }
   0x2   :  { %s14_s7 = sshll.u32 %s91_s6, 4  ;;  %p44_p0 = scmp.ne.s32.totalorder %s128_s0, %s43_s10  ;;  %s15_s7 = int_to_ptr.vmem [resolvable:$true] %s14_s7 }
   0x3   :  { %p47_p1 = scmp.lt.u32.totalorder %s43_s10, %s128_s0 }
   0x5   :  { %p49_p2 = pnand %p47_p1, %p44_p0 }
   0x7   :  { %52 = shalt.err (!%p49_p2)
}
   0x8   :  { %s53_s15 = scalar_lea.vmem %s15_s7, 128  ;;  %p58_p4 = scmp.lt.s32.totalorder %s15_s7, %s15_s7 }
   0x9   :  { %p54_p3 = scmp.ne.s32.totalorder %s15_s7, %s53_s15  ;;  %p59_p5 = scmp.lt.s32.totalorder %s53_s15, %s53_s15 }
   0xb   :  { %p60_p6 = por %p59_p5, %p58_p4 }
   0xd   :  { %p61_p7 = pnand %p60_p6, %p54_p3 }
   0xf   :  { %64 = shalt.err (!%p61_p7)
}
  0x10   :  { %17 = dma.hbm_to_vmem [thread:$0]  %s128_s0, 128, %s15_s7, [#allocation3]  }
  0x11   :  { %87 = dma.done.wait [#allocation3], 128  }
  0x12   :  { %88 = vsyncadd [#allocation3], 4294967168  ;;  %v21_v0 = vld [vmem:[#allocation2] sm:$0xff]  ;;  %s92_s18 = smov 1   ;;  %s93_s19 = smov [#allocation5]  }
  0x13   :  { %22 = vrot.lane.b32.xlu0 %v21_v0, %s92_s18  ;;  %s31_s20 = sshll.u32 %s93_s19, 4  ;;  %s32_s20 = int_to_ptr.vmem [resolvable:$true] %s31_s20 }
  0x14   :  { %s65_s21 = scalar_lea.vmem %s32_s20, 128  ;;  %p70_p9 = scmp.lt.s32.totalorder %s32_s20, %s32_s20 }
  0x15   :  { %p66_p8 = scmp.ne.s32.totalorder %s32_s20, %s65_s21  ;;  %p71_p10 = scmp.lt.s32.totalorder %s65_s21, %s65_s21 }
  0x17   :  { %p72_p11 = por %p71_p10, %p70_p9 }
  0x19   :  { %p73_p12 = pnand %p72_p11, %p66_p8 }
  0x85   :  { %v23_v1 = vpop.permute.xlu0 %22 }
  0x86   :  { %24 = vst [vmem:[#allocation5] sm:$0xff] %v23_v1 }
  0x87   :  { %76 = shalt.err (!%p73_p12)
}
  0x88   :  { %s77_s0 = scalar_lea.hbm %s129_s1, 128 }
  0x89   :  { %p78_p13 = scmp.ne.s32.totalorder %s129_s1, %s77_s0  ;;  %p81_p0 = scmp.lt.u32.totalorder %s77_s0, %s129_s1 }
  0x8b   :  { %p83_p1 = pnand %p81_p0, %p78_p13 }
  0x8d   :  { %86 = shalt.err (!%p83_p1)
}
  0x8e   :  { %34 = dma.vmem_to_hbm [thread:$0]  %s32_s20, 128, %s129_s1, [#allocation4]  }
  0x8f   :  { %89 = dma.done.wait [#allocation4], 128  }
  0x90   :  { %90 = vsyncadd [#allocation4], 4294967168 }
  0x91   :  { %38 = vsyncpa [#allocation3], 1 }
  0x92   :  { %39 = vsyncpa [#allocation4], 1 }

</bundles_post_ra>
